<compile_context>
chip_gen: v7x
topology: tpu7x:2x2x1
jax: 0.10.0
libtpu: 0.0.40
codegen_flags: <defaults>
</compile_context>

<pallas_src>
import math

import jax
import jax.numpy as jnp
from jax import lax
from jax.experimental import pallas as pl
from jax.experimental.pallas import tpu as pltpu


def _self_attention_kernel(x_ref, wqkv_ref, o_ref):
    # x_ref: (Bblk, S, E) bf16 block; wqkv_ref: (E, 3E) bf16, (in, out) with the
    # 1/sqrt(E) scale already folded into the Q columns on the host.
    Bblk, S, E = x_ref.shape

    # Fused QKV projection on a 2-D slab: one LHS push, lane-dense 3E-wide RHS/result.
    # NOTE: when S is not a multiple of the bf16 sublane tile (16) this reshape is a
    # relayout copy rather than a view; negligible at these shapes (see TODO below).
    x2d = x_ref[...].reshape(Bblk * S, E)                       # bf16 (Bblk*S, E)
    qkv = jnp.dot(x2d, wqkv_ref[...],
                  preferred_element_type=jnp.float32)           # (Bblk*S, 3E) f32

    # Slice Q/K/V (scale already folded into W_q), reshape back to batched 3-D while
    # still f32 (f32 sublane tile = 8), then cast to bf16 for the MXU.
    qb = qkv[:, :E].reshape(Bblk, S, E).astype(jnp.bfloat16)
    kb = qkv[:, E:2 * E].reshape(Bblk, S, E).astype(jnp.bfloat16)
    vb = qkv[:, 2 * E:].reshape(Bblk, S, E).astype(jnp.bfloat16)

    # Batched scores: contract on the last dim of both operands (no transpose).
    scores = lax.dot_general(
        qb, kb,
        dimension_numbers=(((2,), (2,)), ((0,), (0,))),
        preferred_element_type=jnp.float32,
    )                                                           # (Bblk, S, S) f32

    # Numerically-stable softmax numerator in f32 (matches F.softmax(dim=-1)).
    m = jnp.max(scores, axis=-1, keepdims=True)
    e = jnp.exp(scores - m)                                     # (Bblk, S, S) f32
    denom = jnp.sum(e, axis=-1, keepdims=True)                  # (Bblk, S, 1) f32

    # Un-normalized attention @ V on the MXU (bf16 inputs, f32 accumulate) ...
    out = lax.dot_general(
        e.astype(jnp.bfloat16), vb,
        dimension_numbers=(((2,), (1,)), ((0,), (0,))),
        preferred_element_type=jnp.float32,
    )                                                           # (Bblk, S, E) f32
    # ... then normalize afterwards with an approx (EUP-slot) reciprocal.
    out = out * pl.reciprocal(denom, approx=True)

    o_ref[...] = out.astype(o_ref.dtype)


def self_attention(x, w_q, w_k, w_v, *, block_b=None, compute_dtype=jnp.bfloat16,
                   out_dtype=None):
    """x: (B, S, E); w_q/w_k/w_v: (E, E) PyTorch-style (out, in). Returns (B, S, E)."""
    B, S, E = x.shape
    out_dtype = x.dtype if out_dtype is None else out_dtype
    out_itemsize = jnp.dtype(out_dtype).itemsize
    scale = 1.0 / math.sqrt(E)

    # Host-side, one-time weight prep: transpose to (in, out), fold 1/sqrt(E) into W_q,
    # fuse Q/K/V into a single (E, 3E) matrix, cast to bf16.
    wqkv = jnp.concatenate(
        [jnp.asarray(w_q).T * scale, jnp.asarray(w_k).T, jnp.asarray(w_v).T],
        axis=1,
    ).astype(compute_dtype)
    x_c = x.astype(compute_dtype)

    # ---- VMEM-budgeted batch-block size ---------------------------------------
    # Dominant per-batch-element VMEM bytes inside one grid step:
    #   x block (bf16, double-buffered)          : 2 * S*E*2
    #   out block (out_dtype, double-buffered)   : 2 * S*E*itemsize
    #   qkv f32 + bf16 q/k/v copies              : S*3E*(4 + 2)
    #   scores + exp (f32)                       : 2 * S*S*4
    #   attn@v f32 accumulator                   : S*E*4
    per_b = S * E * (4 + 2 * out_itemsize + 18 + 4) + 8 * S * S
    weight_bytes = E * 3 * E * jnp.dtype(compute_dtype).itemsize  # Buffered(1): 1 copy
    vmem_budget = 36 * 1024 * 1024            # conservative: fits v5e/v6e/v7x
    if block_b is None:
        block_b = int(max(1, min(B, (vmem_budget - weight_bytes) // max(per_b, 1))))
        if B >= 2:
            block_b = max(1, min(block_b, B // 2))  # >=2 grid steps: both TCs on v7x
    while B % block_b:
        block_b -= 1
    grid = (B // block_b,)

    est_bytes = weight_bytes + block_b * per_b
    vmem_limit = int(min(max(est_bytes * 13 // 10, 32 * 1024 * 1024),
                         56 * 1024 * 1024))   # stay under v7x's 64 MiB physical

    cost = pl.CostEstimate(
        flops=2 * B * S * E * (3 * E) + 2 * 2 * B * S * S * E,
        transcendentals=B * S * S,
        bytes_accessed=(x_c.size * jnp.dtype(compute_dtype).itemsize
                        + wqkv.size * jnp.dtype(compute_dtype).itemsize
                        + B * S * E * out_itemsize),
    )

    # TODO(synk): for long sequences switch to a flash-style online-softmax loop over
    # K/V tiles (256-wide on v6e/v7x, 128 on v5e; kv axis "arbitrary") so the score
    # buffer is (tq, tk) instead of (S, S); unnecessary at these shapes.
    return pl.pallas_call(
        _self_attention_kernel,
        out_shape=jax.ShapeDtypeStruct((B, S, E), out_dtype),
        grid_spec=pltpu.PrefetchScalarGridSpec(
            num_scalar_prefetch=0,
            grid=grid,
            in_specs=[
                pl.BlockSpec((block_b, S, E), lambda b: (b, 0, 0)),   # X batch-block
                # Grid-invariant fused W_qkv: single-buffer (halves weight VMEM).
                pl.BlockSpec((E, 3 * E), lambda b: (0, 0),
                             pipeline_mode=pl.Buffered(1)),
            ],
            out_specs=pl.BlockSpec((block_b, S, E), lambda b: (b, 0, 0)),
        ),
        compiler_params=pltpu.CompilerParams(
            dimension_semantics=("parallel",),
            vmem_limit_bytes=vmem_limit,
        ),
        cost_estimate=cost,
    )(x_c, wqkv)


def _reference(x, w_q, w_k, w_v):
    q = jnp.einsum("bse,oe->bso", x, w_q)
    k = jnp.einsum("bse,oe->bso", x, w_k)
    v = jnp.einsum("bse,oe->bso", x, w_v)
    scores = jnp.einsum("bqe,bke->bqk", q, k) / math.sqrt(x.shape[-1])
    attn = jax.nn.softmax(scores, axis=-1)
    return jnp.einsum("bqk,bke->bqe", attn, v)


if __name__ == "__main__":
    B, S, E = 2, 8, 32
    key = jax.random.PRNGKey(0)
    kx, kq, kk, kv = jax.random.split(key, 4)

    x = jax.random.normal(kx, (B, S, E), dtype=jnp.float32)
    # Deterministic init mimicking nn.Linear's U(-1/sqrt(E), 1/sqrt(E)), weights (out, in).
    bound = 1.0 / math.sqrt(E)
    w_q = jax.random.uniform(kq, (E, E), minval=-bound, maxval=bound, dtype=jnp.float32)
    w_k = jax.random.uniform(kk, (E, E), minval=-bound, maxval=bound, dtype=jnp.float32)
    w_v = jax.random.uniform(kv, (E, E), minval=-bound, maxval=bound, dtype=jnp.float32)

    out = self_attention(x, w_q, w_k, w_v)
    out = jax.block_until_ready(out)

    ref = _reference(x, w_q, w_k, w_v)
    assert out.shape == (B, S, E)
    # Tolerance reflects bf16 MXU inputs + approx (EUP) reciprocal in the softmax.
    assert jnp.allclose(out, ref, atol=3e-2, rtol=3e-2), "mismatch vs. pure-JAX reference"

    print("KERNEL_OK")
</pallas_src>

<mosaic_0001>
module attributes {stable_mosaic.version = 11 : i64} {
  func.func @_self_attention_kernel(%arg0: i32, %arg1: memref<1x8x32xbf16, #tpu.memory_space<vmem>>, %arg2: memref<32x96xbf16, #tpu.memory_space<vmem>>, %arg3: memref<1x8x32xf32, #tpu.memory_space<vmem>>) attributes {dimension_semantics = [#tpu.dimension_semantics<parallel>], iteration_bounds = array<i64: 2>, scalar_prefetch = 0 : i64, scratch_operands = 0 : i64, tpu.core_type = #tpu.core_type<tc>, window_params = [{transform_indices = @transform_0, window_bounds = array<i64: 1, 8, 32>}, {pipeline_mode = #tpu.pipeline_mode<synchronous>, transform_indices = @transform_1, window_bounds = array<i64: 32, 96>}, {transform_indices = @transform_2, window_bounds = array<i64: 1, 8, 32>}]} {
    %c0 = arith.constant 0 : index
    %c0_0 = arith.constant 0 : index
    %c0_1 = arith.constant 0 : index
    %0 = vector.load %arg1[%c0, %c0_0, %c0_1] : memref<1x8x32xbf16, #tpu.memory_space<vmem>>, vector<1x8x32xbf16>
    %1 = vector.shape_cast %0 : vector<1x8x32xbf16> to vector<8x32xbf16>
    %c0_2 = arith.constant 0 : index
    %c0_3 = arith.constant 0 : index
    %2 = vector.load %arg2[%c0_2, %c0_3] : memref<32x96xbf16, #tpu.memory_space<vmem>>, vector<32x96xbf16>
    %cst = arith.constant dense<0.000000e+00> : vector<8x96xf32>
    %3 = tpu.matmul %1, %2, %cst {dimension_numbers = #tpu.dot_dimension_numbers<[1], [0], [0], [1], [0, 0, 1, 1], [], []>} : vector<8x32xbf16>, vector<32x96xbf16>, vector<8x96xf32> -> vector<8x96xf32>
    %4 = vector.extract_strided_slice %3 {offsets = [0, 0], sizes = [8, 32], strides = [1, 1]} : vector<8x96xf32> to vector<8x32xf32>
    %5 = vector.shape_cast %4 : vector<8x32xf32> to vector<1x8x32xf32>
    %6 = arith.truncf %5 : vector<1x8x32xf32> to vector<1x8x32xbf16>
    %7 = vector.extract_strided_slice %3 {offsets = [0, 32], sizes = [8, 32], strides = [1, 1]} : vector<8x96xf32> to vector<8x32xf32>
    %8 = vector.shape_cast %7 : vector<8x32xf32> to vector<1x8x32xf32>
    %9 = arith.truncf %8 : vector<1x8x32xf32> to vector<1x8x32xbf16>
    %10 = vector.extract_strided_slice %3 {offsets = [0, 64], sizes = [8, 32], strides = [1, 1]} : vector<8x96xf32> to vector<8x32xf32>
    %11 = vector.shape_cast %10 : vector<8x32xf32> to vector<1x8x32xf32>
    %12 = arith.truncf %11 : vector<1x8x32xf32> to vector<1x8x32xbf16>
    %cst_4 = arith.constant dense<0.000000e+00> : vector<1x8x8xf32>
    %13 = tpu.matmul %6, %9, %cst_4 {dimension_numbers = #tpu.dot_dimension_numbers<[2], [2], [1], [1], [0, 0, 0, 1, 1, 1], [0], [0]>} : vector<1x8x32xbf16>, vector<1x8x32xbf16>, vector<1x8x8xf32> -> vector<1x8x8xf32>
    %cst_5 = arith.constant dense<0xFF800000> : vector<1x8xf32>
    %14 = vector.multi_reduction <maximumf>, %13, %cst_5 [2] : vector<1x8x8xf32> to vector<1x8xf32>
    %15 = vector.shape_cast %14 : vector<1x8xf32> to vector<1x8x1xf32>
    %16 = vector.broadcast %15 : vector<1x8x1xf32> to vector<1x8x8xf32>
    %17 = arith.subf %13, %16 : vector<1x8x8xf32>
    %18 = math.exp %17 : vector<1x8x8xf32>
    %cst_6 = arith.constant dense<0.000000e+00> : vector<1x8xf32>
    %19 = vector.multi_reduction <add>, %18, %cst_6 [2] : vector<1x8x8xf32> to vector<1x8xf32>
    %20 = vector.shape_cast %19 : vector<1x8xf32> to vector<1x8x1xf32>
    %21 = arith.truncf %18 : vector<1x8x8xf32> to vector<1x8x8xbf16>
    %cst_7 = arith.constant dense<0.000000e+00> : vector<1x8x32xf32>
    %22 = tpu.matmul %21, %12, %cst_7 {dimension_numbers = #tpu.dot_dimension_numbers<[2], [1], [1], [2], [0, 0, 0, 1, 1, 2], [0], [0]>} : vector<1x8x8xbf16>, vector<1x8x32xbf16>, vector<1x8x32xf32> -> vector<1x8x32xf32>
    %23 = tpu.reciprocal %20 {approx = true} : vector<1x8x1xf32> -> vector<1x8x1xf32>
    %24 = vector.broadcast %23 : vector<1x8x1xf32> to vector<1x8x32xf32>
    %25 = arith.mulf %22, %24 : vector<1x8x32xf32>
    %c0_8 = arith.constant 0 : index
    %c0_9 = arith.constant 0 : index
    %c0_10 = arith.constant 0 : index
    %26 = vector.load %arg3[%c0_8, %c0_9, %c0_10] : memref<1x8x32xf32, #tpu.memory_space<vmem>>, vector<1x8x32xf32>
    tpu.vector_store %arg3[%c0_8, %c0_9, %c0_10], %25 {strides = array<i32>} : memref<1x8x32xf32, #tpu.memory_space<vmem>>, vector<1x8x32xf32>,
    return
  }
  func.func @transform_0(%arg0: i32) -> (i32, i32, i32) {
    %c0_i32 = arith.constant 0 : i32
    %c0_i32_0 = arith.constant 0 : i32
    %c0_i32_1 = arith.constant 0 : i32
    return %arg0, %c0_i32, %c0_i32_0 : i32, i32, i32
  }
  func.func @transform_1(%arg0: i32) -> (i32, i32) {
    %c0_i32 = arith.constant 0 : i32
    %c0_i32_0 = arith.constant 0 : i32
    %c0_i32_1 = arith.constant 0 : i32
    return %c0_i32, %c0_i32_0 : i32, i32
  }
  func.func @transform_2(%arg0: i32) -> (i32, i32, i32) {
    %c0_i32 = arith.constant 0 : i32
    %c0_i32_0 = arith.constant 0 : i32
    %c0_i32_1 = arith.constant 0 : i32
    return %arg0, %c0_i32, %c0_i32_0 : i32, i32, i32
  }
}

</mosaic_0001>

<bundles_post_ra>
// kernel: tpu_custom_call.1
= control target key start
LH: loop header
LB: loop body
LE: loop exit
PB: predicated region body
PF: predicated region fallthrough
CT: control target
= control target key end

     0   :  { %7 = vsyncpa [#allocation3], 0  ;;  %s913_s0 = inlined_call_operand.hbm [shape: bf16[2,8,32], index: 0, kind: input, shape index: {}]   ;;  %s914_s1 = inlined_call_operand.hbm [shape: bf16[32,96], index: 1, kind: input, shape index: {}]   ;;  %s915_s2 = inlined_call_operand.hbm [shape: f32[2,8,32], index: 2, kind: output, shape index: {}]  }
   0x1   :  { %9 = vsyncpa [#allocation3 + $0x1], 0 }
   0x2   :  { %10 = vsyncpa [#allocation6], 0 }
   0x3   :  { %11 = vsyncpa [#allocation4], 0 }
   0x4   :  { %13 = vsyncpa [#allocation4 + $0x1], 0  ;;  %s712_s9 = smov 0   ;;  %s714_s10 = smov 0  }
   0x5   :  { %s716_s11 = smov 0   ;;  %s718_s12 = smov 0  }
   0x6 LB: > { %s733_s13 = sadd.s32 4294967295, %s686_s12   ;;  %s443_s14 = sadd.s32 4294967294, %s686_s12   ;;  %s686_s12 = sphi %s718_s12, %s935_s12   ;;  %s682_s11 = sphi %s716_s11, %s934_s11   ;;  %s678_s10 = sphi %s714_s10, %s933_s10   ;;  %s674_s9 = sphi %s712_s9, %s932_s9  }
   0x7   : > { %p39_p0 = scmp.ne.s32.totalorder %s678_s10, %s674_s9  ;;  %p916_p1 = scmp.eq.s32.totalorder %s733_s13, 0 }
   0x8   : > { %p90_p3 = scmp.eq.s32.totalorder %s443_s14, 1  ;;  %p444_p5 = scmp.ge.s32.totalorder %s686_s12, 1 }
   0x9   : > { %p742_p4 = por %p916_p1, %p39_p0  ;;  %p97_p7 = scmp.lt.s32.totalorder %s686_s12, 3 }
   0xa   : > { %p747_p6 = por %p90_p3, %p39_p0  ;;  %s688_s18 = smov [#allocation5]  }
   0xb   : > { %s919_s15 = scalar_select %p742_p4, 1, 0 }
   0xc   : > { %s920_s16 = scalar_select %p747_p6, 1, 0 }
   0xd   : > { %p752_p8 = pnand %p444_p5, %p97_p7  ;;  %s109_s19 = sshll.u32 %s688_s18, 4  ;;  %s756_s19 = int_to_ptr.vmem [resolvable:$true] %s109_s19 }
   0xe   : > { %s768_s21 = sadd.s32 1, %s686_s12   ;;  %s26_s22 = sadd.s32 1, %s682_s11 }
   0xf   : > { %s921_s17 = scalar_select %p752_p8, 1, 0 }
  0x10   : > { %p497_p9 = pneg %p752_p8  ;;  %s23_s23 = ssub.s32 %s686_s12, %s768_s21 }
  0x11   : > { %s558_s26 = scalar_lea.hbm %s914_s1, 256 }
  0x12   : > { %p763_p11 = pnand %p497_p9, %p916_p1  ;;  %p559_p12 = scmp.ne.s32.totalorder %s914_s1, %s558_s26 }
  0x13   : > { %p565_p5 = scmp.lt.u32.totalorder %s558_s26, %s914_s1 }
  0x14   : > { %p560_p13 = pneg %p763_p11 }
  0x16   : > { %p561_p0 = pnand %p560_p13, %p559_p12 }
  0x18   : > { %p562_p3 = pneg %p561_p0 }
  0x1a   : > { %p567_p7 = pnand %p565_p5, %p562_p3 }
  0x1c   : > { %570 = shalt.err (!%p567_p7)
}
  0x1d   : > { %s571_s3 = scalar_lea.vmem %s756_s19, 256  ;;  %p579_p2 = scmp.lt.s32.totalorder %s756_s19, %s756_s19 }
  0x1e   : > { %p572_p9 = scmp.ne.s32.totalorder %s756_s19, %s571_s3  ;;  %p580_p6 = scmp.lt.s32.totalorder %s571_s3, %s571_s3 }
  0x20   : > { %p574_p10 = pnand %p572_p9, %p560_p13  ;;  %p581_p4 = por %p580_p6, %p579_p2 }
  0x22   : > { %p575_p1 = pneg %p574_p10 }
  0x24   : > { %p582_p8 = pnand %p581_p4, %p575_p1 }
  0x26   : > { %585 = shalt.err (!%p582_p8)
}
  0x27   : > { %s689_s4 = smov 64   ;;  %s690_s5 = smov 4  }
  0x28   : > { %500 = dma.hbm_to_vmem [thread:$0]  (!%p763_p11), %s914_s1, 256, %s756_s19, [#allocation6], %s689_s4, %s689_s4, %s690_s5  }
  0x29   : > { %p24_p2 = scmp.eq.s32.totalorder %s23_s23, 0  ;;  %p33_p1 = scmp.ne.s32.totalorder %s682_s11, %s678_s10 }
  0x2a   : > { %p34_p4 = scmp.eq.s32.totalorder %s686_s12, 0  ;;  %p510_p6 = scmp.lt.s32.totalorder %s686_s12, 2 }
  0x2b   : > { %s799_s8 = scalar_select %p24_p2, %s682_s11, %s26_s22  }
  0x2c   : > { %p35_p8 = por %p34_p4, %p33_p1  ;;  %p923_p10 = scmp.eq.s32.totalorder %s733_s13, 1 }
  0x2d   : > { %s123_s18 = sand.u32 1, %s682_s11   ;;  %s448_s24 = sshll.u32 %s686_s12, 6 }
  0x2e   : > { %p803_p12 = por %p923_p10, %p33_p1  ;;  %s447_s25 = sshll.u32 %s123_s18, 2 }
  0x2f   : > { %s812_s27 = scalar_lea.hbm %s913_s0, %s448_s24  ;;  %s127_s19 = scalar_lea.vmem [#allocation2], %s447_s25 }
  0x30   : > { %s134_s22 = sshll.u32 %s127_s19, 4  ;;  %p814_p11 = pnand %p510_p6, %p35_p8  ;;  %s818_s22 = int_to_ptr.vmem [resolvable:$true] %s134_s22 }
  0x31   : > { %s124_s28 = scalar_lea.sflag [#allocation3], %s123_s18  ;;  %s586_s29 = scalar_lea.hbm %s812_s27, 64 }
  0x32   : > { %p587_p13 = scmp.ne.s32.totalorder %s812_s27, %s586_s29  ;;  %p588_p0 = pneg %p814_p11 }
  0x33   : > { %s591_s4 = scalar_lea.hbm %s913_s0, 128  ;;  %p592_p7 = scmp.lt.u32.totalorder %s812_s27, %s913_s0 }
  0x34   : > { %p589_p3 = pnand %p588_p0, %p587_p13  ;;  %p593_p9 = scmp.lt.u32.totalorder %s591_s4, %s586_s29 }
  0x35   : > { %p595_p1 = scmp.lt.u32.totalorder %s586_s29, %s812_s27 }
  0x36   : > { %p590_p5 = pneg %p589_p3  ;;  %p594_p2 = por %p593_p9, %p592_p7 }
  0x38   : > { %p596_p4 = por %p595_p1, %p594_p2 }
  0x3a   : > { %p597_p6 = pnand %p596_p4, %p590_p5 }
  0x3c   : > { %600 = shalt.err (!%p597_p6)
}
  0x3d   : > { %s601_s7 = scalar_lea.vmem %s818_s22, 64  ;;  %s691_s18 = smov [#allocation2]  }
  0x3e   : > { %p602_p8 = scmp.ne.s32.totalorder %s818_s22, %s601_s7  ;;  %s606_s24 = sshll.u32 %s691_s18, 4  ;;  %s607_s24 = int_to_ptr.vmem [resolvable:$false] %s606_s24 }
  0x3f   : > { %s608_s25 = scalar_lea.vmem %s607_s24, 128  ;;  %p609_p3 = scmp.lt.s32.totalorder %s818_s22, %s607_s24 }
  0x40   : > { %p604_p10 = pnand %p602_p8, %p588_p0  ;;  %p610_p7 = scmp.lt.s32.totalorder %s608_s25, %s601_s7 }
  0x42   : > { %p605_p13 = pneg %p604_p10  ;;  %p611_p9 = por %p610_p7, %p609_p3 }
  0x44   : > { %p612_p2 = pnand %p611_p9, %p605_p13 }
  0x46   : > { %615 = shalt.err (!%p612_p2)
}
  0x47   : > { %504 = dma.hbm_to_vmem [thread:$0]  (!%p814_p11), %s812_s27, 64, %s818_s22, %s124_s28  }
  0x48   : > { %p926_p5 = scmp.ne.s32.totalorder %s921_s17, 0 }
  0x49   : > { %s848_s20 = sand.u32 (!%p926_p5), 1, %s678_s10   ;;  %p927_p0 = scmp.ne.s32.totalorder (!%p926_p5), %s919_s15, 0 }
  0x4a   : > { %143 = sbr.rel (%p926_p5) target bundleno = 1032 (0x408), region = 28  ;;  %s450_s26 = sshll.u32 (!%p926_p5), %s848_s20, 2 }
  0x4b   : > { %s146_s19 = scalar_lea.sflag (!%p926_p5), [#allocation3], %s848_s20  ;;  %s149_s29 = scalar_lea.vmem (!%p926_p5), [#allocation2], %s450_s26 }
  0x51   : > { %661 = dma.done.wait (%p927_p0), %s146_s19, 64  }
  0x52   : > { %663 = vsyncadd (%p927_p0), %s146_s19, 4294967232  ;;  %p928_p1 = scmp.eq.s32.totalorder %s733_s13, 0 }
  0x54   : > { %665 = dma.done.wait (%p928_p1), [#allocation6], 256   ;;  %p929_p11 = pmov %p928_p1 }
  0x55   : > { %v692_v0 = vmov 0.0   ;;  %vm693_vm0 = vmmov 0   ;;  %v552_v1 = vld [vmem:[#allocation5] sm:$0xff]   ;;  %v553_v2 = vld [vmem:[#allocation5 + $0x8] sm:$0xff]   ;;  %v175_v3 = vld [vmem:[%s149_s29] sm:$0xf] }
  0x56   : > { %667 = vsyncadd (%p929_p11), [#allocation6], 4294967040  ;;  %469 = vmatprep.subr.bf16.mxu0 %v692_v0  ;;  %473 = vmatprep.mubr.msk.bf16.mxu0 %vm693_vm0, %v692_v0  ;;  %vm192_vm1 = vcmask 261120   ;;  %s694_s15 = smov 64   ;;  %s695_s17 = smov 96   ;;  %vm302_vm2 = vcmask 1043456  }
  0x57   : > { %477 = vmatprep.subr.bf16.mxu1 %v692_v0  ;;  %479 = vmatprep.mubr.msk.bf16.mxu1 %vm693_vm0, %v692_v0  ;;  %vm286_vm3 = vcmask 64512   ;;  %s452_s27 = sshll.u32 %s848_s20, 3  ;;  %s459_s22 = sshll.u32 %s733_s13, 7 }
  0x58   : > { %470 = vmatpush3.bf16.msra.mxu0 %v552_v1  ;;  %s173_s23 = scalar_lea.vmem [#allocation7], %s452_s27  ;;  %s868_s4 = scalar_lea.hbm %s915_s2, %s459_s22 }
  0x59   : > { %471 = vmatprep.subr.bf16.mxu0 %v692_v0  ;;  %s363_s28 = sshll.u32 %s173_s23, 4  ;;  %s350_s13 = scalar_lea.sflag [#allocation4], %s848_s20  ;;  %s870_s28 = int_to_ptr.vmem [resolvable:$true] %s363_s28 }
  0x5a   : > { %s616_s5 = scalar_lea.vmem %s870_s28, 128  ;;  %s696_s6 = smov [#allocation7]  }
  0x5b   : > { %p617_p4 = scmp.ne.s32.totalorder %s870_s28, %s616_s5  ;;  %s620_s7 = sshll.u32 %s696_s6, 4  ;;  %s621_s7 = int_to_ptr.vmem [resolvable:$false] %s620_s7 }
  0x5c   : > { %472 = vmatpush3.bf16.msra.mxu0 %v553_v2  ;;  %s622_s18 = scalar_lea.vmem %s621_s7, 256  ;;  %p623_p10 = scmp.lt.s32.totalorder %s870_s28, %s621_s7 }
  0x5d   : > { %483 = vmatprep.subr.bf16.mxu0 %v692_v0  ;;  %p618_p6 = pnand %p617_p4, %p803_p12  ;;  %p624_p13 = scmp.lt.s32.totalorder %s622_s18, %s616_s5 }
  0x5f   : > { %474 = vmatmul.mubr.msk.bf16.vlgmr.msra.gmra.mrb[0].mxu0 %vm192_vm1, %v175_v3  ;;  %p619_p8 = pneg %p618_p6  ;;  %p625_p3 = por %p624_p13, %p623_p10 }
  0x60   : > { %485 = vmatprep.mubr.msk.bf16.mxu0 %vm693_vm0, %v692_v0 }
  0x61   : > { %p626_p7 = pnand %p625_p3, %p619_p8 }
 0x132   : > { %v230_v4 = vpop.f32.mrb[0].mxu0 }
 0x133   : > { %v236_v5 = vpack.c.bf16 %v230_v4, %v230_v4  ;;  %v475_v6 = vpop.f32.mrb[1].mxu0 }
 0x134   : > { %v233_v7 = vpop.f32.mrb[2].mxu0 }
 0x135   : > { %297 = vrot.lane.b32.xlu1 %v236_v5, %s694_s15  ;;  %238 = vrot.lane.b32.xlu0 %v236_v5, %s695_s17  ;;  %v476_v8 = vpop.f32.mrb[3].mxu0 }
 0x1a7   : > { %v298_v9 = vpop.permute.xlu1 %297  ;;  %v239_v10 = vpop.permute.xlu0 %238 }
 0x1a8   : > { %v304_v11 = vsel %vm302_vm2, %v298_v9, 0  ;;  %v244_v12 = vsel %vm192_vm1, %v239_v10, 0 }
 0x1a9   : > { %478 = vmatpush3.bf16.xpose.msra.mxu1 %v244_v12  ;;  %484 = vmatpush3.bf16.msra.mxu0 %v304_v11 }
 0x1b0   : > { %480 = vmatmul.mubr.msk.bf16.vlgmr.msra.gmra.mrb[0].mxu1 %vm192_vm1, %v236_v5 }
 0x283   : > { %v280_v13 = vpop.f32.mrb[0].mxu1 }
 0x284   : > { %v481_v14 = vpop.f32.mrb[1].mxu1  ;;  %v287_v15 = vsel %vm286_vm3, %v280_v13, -inf }
 0x285   : > { %288 = vmax.xlane.f32.xlu0 %v287_v15  ;;  %v283_v16 = vpop.f32.mrb[2].mxu1 }
 0x286   : > { %v482_v17 = vpop.f32.mrb[3].mxu1 }
 0x312   : > { %v289_v18 = vpop.xlane.xlu0 %288 }
 0x313   : > { %v290_v19 = vsub.f32 %v280_v13, %v289_v18 }
 0x315   : > { %v291_v20 = vmul.f32 1.442695, %v290_v19 }
 0x317   : > { %554 = vpow2.f32 %v291_v20 }
 0x321   : > { %v555_v21 = vpop.eup %554 }
 0x322   : > { %v293_v22 = vsel %vm286_vm3, %v555_v21, 0.0  ;;  %v296_v23 = vpack.c.bf16 %v555_v21, %v555_v21 }
 0x323   : > { %294 = vadd.xlane.f32.xlu1 %v293_v22 }
 0x324   : > { %486 = vmatmul.mubr.msk.bf16.vlgmr.msra.gmra.mrb[4].mxu0 %vm286_vm3, %v296_v23 }
 0x3b0   : > { %v295_v24 = vpop.xlane.xlu1 %294 }
 0x3b1   : > { %556 = vrcp.f32 %v295_v24 }
 0x3bb   : > { %v557_v25 = vpop.eup %556 }
 0x3f7   : > { %v340_v26 = vpop.f32.mrb[4].mxu0 }
 0x3f8   : > { %v347_v27 = vmul.f32 %v557_v25, %v340_v26  ;;  %v487_v28 = vpop.f32.mrb[5].mxu0 }
 0x3f9   : > { %v343_v29 = vpop.f32.mrb[6].mxu0 }
 0x3fa   : > { %v488_v30 = vpop.f32.mrb[7].mxu0  ;;  %348 = vst.msk [vmem:[%s173_s23] sm:$0xff] %vm192_vm1, %v347_v27 }
 0x3fb   : > { %629 = shalt.err (!%p626_p7)
}
 0x3fc   : > { %s630_s24 = scalar_lea.hbm %s868_s4, 128  ;;  %s634_s26 = scalar_lea.hbm %s915_s2, 256 }
 0x3fd   : > { %p631_p9 = scmp.ne.s32.totalorder %s868_s4, %s630_s24  ;;  %p635_p0 = scmp.lt.u32.totalorder %s868_s4, %s915_s2 }
 0x3fe   : > { %p636_p1 = scmp.lt.u32.totalorder %s634_s26, %s630_s24  ;;  %p638_p4 = scmp.lt.u32.totalorder %s630_s24, %s868_s4 }
 0x3ff   : > { %p632_p2 = pnand %p631_p9, %p803_p12 }
 0x400   : > { %p637_p11 = por %p636_p1, %p635_p0 }
 0x401   : > { %p633_p5 = pneg %p632_p2 }
 0x402   : > { %p639_p6 = por %p638_p4, %p637_p11 }
 0x404   : > { %p640_p8 = pnand %p639_p6, %p633_p5 }
 0x406   : > { %643 = shalt.err (!%p640_p8)
}
 0x407   : > { %495 = dma.vmem_to_hbm [thread:$0]  (%p803_p12), %s870_s28, 128, %s868_s4, %s350_s13  }
 0x408 PF: > { %s375_s15 = sand.u32 1, %s674_s9   ;;  %p930_p10 = scmp.ne.s32.totalorder %s920_s16, 0 }
 0x409   : > { %p931_p13 = scmp.ge.s32.totalorder %s686_s12, 2  ;;  %s376_s17 = scalar_lea.sflag [#allocation4], %s375_s15 }
 0x40b   : > { %p506_p3 = pnand %p931_p13, %p930_p10 }
 0x40d   : > { %669 = dma.done.wait (!%p506_p3), %s376_s17, 128  }
 0x40e   : > { %671 = vsyncadd (!%p506_p3), %s376_s17, 4294967168  ;;  %p16_p7 = scmp.ge.s32.totalorder %s768_s21, 4   ;;  %s932_s9 = smov %s678_s10 }
 0x40f   : > { %s933_s10 = smov %s682_s11  ;;  %s934_s11 = smov %s799_s8 }
 0x410   : > { %s935_s12 = smov %s768_s21  ;;  %18 = sbr.rel (!%p16_p7) target bundleno = 6 (0x6), region = 77 }
 0x417   :  { %381 = vsyncpa [#allocation3], 1 }
 0x418   :  { %383 = vsyncpa [#allocation3 + $0x1], 1 }
 0x419   :  { %384 = vsyncpa [#allocation6], 1 }
 0x41a   :  { %385 = vsyncpa [#allocation4], 1 }
 0x41b   :  { %387 = vsyncpa [#allocation4 + $0x1], 1 }

</bundles_post_ra>
